<compile_context>
chip_gen: v7x
topology: tpu7x:2x2x1
jax: 0.10.0
libtpu: 0.0.40
codegen_flags: <defaults>
</compile_context>

<pallas_src>
import jax
import jax.numpy as jnp
from jax.experimental import pallas as pl
from jax.experimental.pallas import tpu as pltpu

NEG_SLOPE = 0.1  # LeakyReLU negative slope


# ------------------------------- kernel ------------------------------------

def fusion_gate_kernel(x_ref, w1_ref, b1_ref, w2_ref, b2_ref, o_ref):
    # x block: (1, M, TR, 128) f32 — channel axis is a MAJOR dim, not sublanes.
    x = x_ref[0]                                             # (M, TR, 128)
    M = x.shape[0]

    # conv1 (M -> 1): per-voxel channel mix, unrolled scalar*slab (VALU only).
    g1 = x[0] * w1_ref[0]
    for m in range(1, M):
        g1 = g1 + x[m] * w1_ref[m]
    g1 = g1 + b1_ref[0]
    h = jnp.where(g1 > 0, g1, NEG_SLOPE * g1)                # LeakyReLU(0.1)

    # conv2 (1 -> M) + softmax over channels, fully unrolled (no XLU reduces).
    logits = [w2_ref[m] * h + b2_ref[m] for m in range(M)]   # M x (TR, 128)
    mmax = logits[0]
    for m in range(1, M):
        mmax = jnp.maximum(mmax, logits[m])
    es = [jnp.exp(l - mmax) for l in logits]
    denom = es[0]
    for m in range(1, M):
        denom = denom + es[m]
    inv = pl.reciprocal(denom, approx=False)                 # 1 recip, not M divides

    # out = relu(x*gate + x) == relu(x * (gate + 1))
    for m in range(M):
        o_ref[0, m] = jnp.maximum(x[m] * (es[m] * inv + 1.0),
                                  0.0).astype(o_ref.dtype)


# ------------------------------- wrapper ------------------------------------

def _round_up(v, m):
    return -(-v // m) * m


def _choose_tiling(S, n_batch, max_tr=512):
    """Pick TR (rows of 128 lanes per block, multiple of 8) and padded row count R.

    max_tr=512 -> 512*128 = 65536 voxels/block = 1 MiB f32 in + 1 MiB out,
    double-buffered ~4 MiB: well under the scoped-VMEM default on every gen.
    """
    R0 = -(-S // 128)                       # rows needed to cover S
    TR = min(max_tr, _round_up(R0, 8))
    R = _round_up(R0, TR)
    # Keep at least 2 grid programs so a v7x chip can use both TensorCores.
    while n_batch * (R // TR) < 2 and TR > 8:
        TR = max(8, _round_up(TR // 2, 8))
        R = _round_up(R0, TR)
    return TR, R


def cross_modality_fusion_gate(x, params):
    """x: (N, M, D, H, W) float32 (PyTorch NCDHW).  Returns same shape."""
    w1, b1, w2, b2 = params
    N, M, D, H, W = x.shape
    S = D * H * W
    TR, R = _choose_tiling(S, N)
    S_pad = R * 128

    xf = x.reshape(N, M, S)                 # contiguous, order-preserving
    if S_pad != S:
        xf = jnp.pad(xf, ((0, 0), (0, 0), (0, S_pad - S)))
    xr = xf.reshape(N, M, R, 128)           # lane-dense layout, channels major

    smem_spec = pl.BlockSpec(memory_space=pltpu.MemorySpace.SMEM)

    out = pl.pallas_call(
        fusion_gate_kernel,
        out_shape=jax.ShapeDtypeStruct((N, M, R, 128), jnp.float32),
        grid_spec=pltpu.PrefetchScalarGridSpec(
            num_scalar_prefetch=0,
            grid=(N, R // TR),
            in_specs=[
                pl.BlockSpec((1, M, TR, 128), lambda n, r: (n, 0, r, 0)),
                smem_spec,   # w1 (M,)
                smem_spec,   # b1 (1,)
                smem_spec,   # w2 (M,)
                smem_spec,   # b2 (M,)
            ],
            out_specs=pl.BlockSpec((1, M, TR, 128), lambda n, r: (n, 0, r, 0)),
        ),
        compiler_params=pltpu.CompilerParams(
            dimension_semantics=("parallel", "parallel")),
    )(xr, w1, b1, w2, b2)

    out = out.reshape(N, M, S_pad)
    if S_pad != S:
        out = out[:, :, :S]
    return out.reshape(N, M, D, H, W)


# ------------------------- deterministic parameters -------------------------

def init_params(key, mod_num):
    ks = jax.random.split(key, 4)
    # kaiming_normal(fan_out, relu): std = sqrt(2 / fan_out); kernel volume = 1.
    std1 = jnp.sqrt(2.0 / 1.0)         # conv1: mod -> 1
    std2 = jnp.sqrt(2.0 / mod_num)     # conv2: 1 -> mod
    w1 = jax.random.normal(ks[0], (mod_num,), jnp.float32) * std1
    w2 = jax.random.normal(ks[1], (mod_num,), jnp.float32) * std2
    # Module init zeroes the biases; use small nonzero values so the bias path
    # is actually exercised by the correctness check.
    b1 = jax.random.normal(ks[2], (1,), jnp.float32) * 0.1
    b2 = jax.random.normal(ks[3], (mod_num,), jnp.float32) * 0.1
    return (w1, b1, w2, b2)


# ------------------------------ JAX reference --------------------------------

def cross_modality_fusion_gate_ref(x, params):
    w1, b1, w2, b2 = params
    g1 = jnp.einsum('nmdhw,m->ndhw', x, w1) + b1[0]
    h = jnp.where(g1 > 0, g1, NEG_SLOPE * g1)
    logits = (h[:, None, :, :, :] * w2[None, :, None, None, None]
              + b2[None, :, None, None, None])
    gate = jax.nn.softmax(logits, axis=1)
    return jax.nn.relu(x * gate + x)


# ---------------------------------- main ------------------------------------

if __name__ == "__main__":
    N, mod_num, D, H, W = 2, 4, 8, 8, 8

    key = jax.random.PRNGKey(0)
    kx, kp = jax.random.split(key)
    x = jax.random.normal(kx, (N, mod_num, D, H, W), jnp.float32)
    params = init_params(kp, mod_num)

    out = jax.block_until_ready(cross_modality_fusion_gate(x, params))
    ref = jax.block_until_ready(cross_modality_fusion_gate_ref(x, params))

    assert out.shape == (N, mod_num, D, H, W)
    assert jnp.allclose(out, ref, atol=1e-5, rtol=1e-5), (
        float(jnp.max(jnp.abs(out - ref))))
    print("KERNEL_OK")
</pallas_src>

<mosaic_0001>
module attributes {stable_mosaic.version = 11 : i64} {
  func.func @fusion_gate_kernel(%arg0: i32, %arg1: i32, %arg2: memref<1x4x8x128xf32, #tpu.memory_space<vmem>>, %arg3: memref<4xf32, #tpu.memory_space<smem>>, %arg4: memref<1xf32, #tpu.memory_space<smem>>, %arg5: memref<4xf32, #tpu.memory_space<smem>>, %arg6: memref<4xf32, #tpu.memory_space<smem>>, %arg7: memref<1x4x8x128xf32, #tpu.memory_space<vmem>>) attributes {dimension_semantics = [#tpu.dimension_semantics<parallel>, #tpu.dimension_semantics<parallel>], iteration_bounds = array<i64: 2, 1>, scalar_prefetch = 0 : i64, scratch_operands = 0 : i64, tpu.core_type = #tpu.core_type<tc>, window_params = [{transform_indices = @transform_0, window_bounds = array<i64: 1, 4, 8, 128>}, {transform_indices = @transform_1, window_bounds = array<i64: 4>}, {transform_indices = @transform_2, window_bounds = array<i64: 1>}, {transform_indices = @transform_3, window_bounds = array<i64: 4>}, {transform_indices = @transform_4, window_bounds = array<i64: 4>}, {transform_indices = @transform_5, window_bounds = array<i64: 1, 4, 8, 128>}]} {
    %c0 = arith.constant 0 : index
    %c0_0 = arith.constant 0 : index
    %c0_1 = arith.constant 0 : index
    %c0_2 = arith.constant 0 : index
    %0 = vector.load %arg2[%c0, %c0_0, %c0_1, %c0_2] : memref<1x4x8x128xf32, #tpu.memory_space<vmem>>, vector<1x4x8x128xf32>
    %1 = vector.shape_cast %0 : vector<1x4x8x128xf32> to vector<4x8x128xf32>
    %2 = vector.extract_strided_slice %1 {offsets = [0, 0, 0], sizes = [1, 8, 128], strides = [1, 1, 1]} : vector<4x8x128xf32> to vector<1x8x128xf32>
    %3 = vector.shape_cast %2 : vector<1x8x128xf32> to vector<8x128xf32>
    %c0_3 = arith.constant 0 : index
    %4 = memref.load %arg3[%c0_3] : memref<4xf32, #tpu.memory_space<smem>>
    %5 = vector.broadcast %4 : f32 to vector<8x128xf32>
    %6 = arith.mulf %3, %5 : vector<8x128xf32>
    %7 = vector.extract_strided_slice %1 {offsets = [1, 0, 0], sizes = [1, 8, 128], strides = [1, 1, 1]} : vector<4x8x128xf32> to vector<1x8x128xf32>
    %8 = vector.shape_cast %7 : vector<1x8x128xf32> to vector<8x128xf32>
    %c1 = arith.constant 1 : index
    %9 = memref.load %arg3[%c1] : memref<4xf32, #tpu.memory_space<smem>>
    %10 = vector.broadcast %9 : f32 to vector<8x128xf32>
    %11 = arith.mulf %8, %10 : vector<8x128xf32>
    %12 = arith.addf %6, %11 : vector<8x128xf32>
    %13 = vector.extract_strided_slice %1 {offsets = [2, 0, 0], sizes = [1, 8, 128], strides = [1, 1, 1]} : vector<4x8x128xf32> to vector<1x8x128xf32>
    %14 = vector.shape_cast %13 : vector<1x8x128xf32> to vector<8x128xf32>
    %c2 = arith.constant 2 : index
    %15 = memref.load %arg3[%c2] : memref<4xf32, #tpu.memory_space<smem>>
    %16 = vector.broadcast %15 : f32 to vector<8x128xf32>
    %17 = arith.mulf %14, %16 : vector<8x128xf32>
    %18 = arith.addf %12, %17 : vector<8x128xf32>
    %19 = vector.extract_strided_slice %1 {offsets = [3, 0, 0], sizes = [1, 8, 128], strides = [1, 1, 1]} : vector<4x8x128xf32> to vector<1x8x128xf32>
    %20 = vector.shape_cast %19 : vector<1x8x128xf32> to vector<8x128xf32>
    %c3 = arith.constant 3 : index
    %21 = memref.load %arg3[%c3] : memref<4xf32, #tpu.memory_space<smem>>
    %22 = vector.broadcast %21 : f32 to vector<8x128xf32>
    %23 = arith.mulf %20, %22 : vector<8x128xf32>
    %24 = arith.addf %18, %23 : vector<8x128xf32>
    %c0_4 = arith.constant 0 : index
    %25 = memref.load %arg4[%c0_4] : memref<1xf32, #tpu.memory_space<smem>>
    %26 = vector.broadcast %25 : f32 to vector<8x128xf32>
    %27 = arith.addf %24, %26 : vector<8x128xf32>
    %cst = arith.constant 0.000000e+00 : f32
    %28 = vector.broadcast %cst : f32 to vector<8x128xf32>
    %29 = arith.cmpf ogt, %27, %28 : vector<8x128xf32>
    %cst_5 = arith.constant 1.000000e-01 : f32
    %30 = vector.broadcast %cst_5 : f32 to vector<8x128xf32>
    %31 = arith.mulf %30, %27 : vector<8x128xf32>
    %32 = arith.select %29, %27, %31 : vector<8x128xi1>, vector<8x128xf32>
    %c0_6 = arith.constant 0 : index
    %33 = memref.load %arg5[%c0_6] : memref<4xf32, #tpu.memory_space<smem>>
    %34 = vector.broadcast %33 : f32 to vector<8x128xf32>
    %35 = arith.mulf %34, %32 : vector<8x128xf32>
    %c0_7 = arith.constant 0 : index
    %36 = memref.load %arg6[%c0_7] : memref<4xf32, #tpu.memory_space<smem>>
    %37 = vector.broadcast %36 : f32 to vector<8x128xf32>
    %38 = arith.addf %35, %37 : vector<8x128xf32>
    %c1_8 = arith.constant 1 : index
    %39 = memref.load %arg5[%c1_8] : memref<4xf32, #tpu.memory_space<smem>>
    %40 = vector.broadcast %39 : f32 to vector<8x128xf32>
    %41 = arith.mulf %40, %32 : vector<8x128xf32>
    %c1_9 = arith.constant 1 : index
    %42 = memref.load %arg6[%c1_9] : memref<4xf32, #tpu.memory_space<smem>>
    %43 = vector.broadcast %42 : f32 to vector<8x128xf32>
    %44 = arith.addf %41, %43 : vector<8x128xf32>
    %c2_10 = arith.constant 2 : index
    %45 = memref.load %arg5[%c2_10] : memref<4xf32, #tpu.memory_space<smem>>
    %46 = vector.broadcast %45 : f32 to vector<8x128xf32>
    %47 = arith.mulf %46, %32 : vector<8x128xf32>
    %c2_11 = arith.constant 2 : index
    %48 = memref.load %arg6[%c2_11] : memref<4xf32, #tpu.memory_space<smem>>
    %49 = vector.broadcast %48 : f32 to vector<8x128xf32>
    %50 = arith.addf %47, %49 : vector<8x128xf32>
    %c3_12 = arith.constant 3 : index
    %51 = memref.load %arg5[%c3_12] : memref<4xf32, #tpu.memory_space<smem>>
    %52 = vector.broadcast %51 : f32 to vector<8x128xf32>
    %53 = arith.mulf %52, %32 : vector<8x128xf32>
    %c3_13 = arith.constant 3 : index
    %54 = memref.load %arg6[%c3_13] : memref<4xf32, #tpu.memory_space<smem>>
    %55 = vector.broadcast %54 : f32 to vector<8x128xf32>
    %56 = arith.addf %53, %55 : vector<8x128xf32>
    %57 = arith.maximumf %38, %44 : vector<8x128xf32>
    %58 = arith.maximumf %57, %50 : vector<8x128xf32>
    %59 = arith.maximumf %58, %56 : vector<8x128xf32>
    %60 = arith.subf %38, %59 : vector<8x128xf32>
    %61 = math.exp %60 : vector<8x128xf32>
    %62 = arith.subf %44, %59 : vector<8x128xf32>
    %63 = math.exp %62 : vector<8x128xf32>
    %64 = arith.subf %50, %59 : vector<8x128xf32>
    %65 = math.exp %64 : vector<8x128xf32>
    %66 = arith.subf %56, %59 : vector<8x128xf32>
    %67 = math.exp %66 : vector<8x128xf32>
    %68 = arith.addf %61, %63 : vector<8x128xf32>
    %69 = arith.addf %68, %65 : vector<8x128xf32>
    %70 = arith.addf %69, %67 : vector<8x128xf32>
    %71 = tpu.reciprocal %70 : vector<8x128xf32> -> vector<8x128xf32>
    %72 = vector.extract_strided_slice %1 {offsets = [0, 0, 0], sizes = [1, 8, 128], strides = [1, 1, 1]} : vector<4x8x128xf32> to vector<1x8x128xf32>
    %73 = vector.shape_cast %72 : vector<1x8x128xf32> to vector<8x128xf32>
    %74 = arith.mulf %61, %71 : vector<8x128xf32>
    %cst_14 = arith.constant 1.000000e+00 : f32
    %75 = vector.broadcast %cst_14 : f32 to vector<8x128xf32>
    %76 = arith.addf %74, %75 : vector<8x128xf32>
    %77 = arith.mulf %73, %76 : vector<8x128xf32>
    %cst_15 = arith.constant 0.000000e+00 : f32
    %78 = vector.broadcast %cst_15 : f32 to vector<8x128xf32>
    %79 = arith.maximumf %77, %78 : vector<8x128xf32>
    %c0_16 = arith.constant 0 : index
    %c0_17 = arith.constant 0 : index
    %c0_18 = arith.constant 0 : index
    %c0_19 = arith.constant 0 : index
    %80 = vector.load %arg7[%c0_16, %c0_17, %c0_18, %c0_19] : memref<1x4x8x128xf32, #tpu.memory_space<vmem>>, vector<1x1x8x128xf32>
    %81 = vector.shape_cast %80 : vector<1x1x8x128xf32> to vector<8x128xf32>
    %82 = vector.shape_cast %79 : vector<8x128xf32> to vector<1x1x8x128xf32>
    tpu.vector_store %arg7[%c0_16, %c0_17, %c0_18, %c0_19], %82 {strides = array<i32>} : memref<1x4x8x128xf32, #tpu.memory_space<vmem>>, vector<1x1x8x128xf32>,
    %83 = vector.extract_strided_slice %1 {offsets = [1, 0, 0], sizes = [1, 8, 128], strides = [1, 1, 1]} : vector<4x8x128xf32> to vector<1x8x128xf32>
    %84 = vector.shape_cast %83 : vector<1x8x128xf32> to vector<8x128xf32>
    %85 = arith.mulf %63, %71 : vector<8x128xf32>
    %cst_20 = arith.constant 1.000000e+00 : f32
    %86 = vector.broadcast %cst_20 : f32 to vector<8x128xf32>
    %87 = arith.addf %85, %86 : vector<8x128xf32>
    %88 = arith.mulf %84, %87 : vector<8x128xf32>
    %cst_21 = arith.constant 0.000000e+00 : f32
    %89 = vector.broadcast %cst_21 : f32 to vector<8x128xf32>
    %90 = arith.maximumf %88, %89 : vector<8x128xf32>
    %c0_22 = arith.constant 0 : index
    %c1_23 = arith.constant 1 : index
    %c0_24 = arith.constant 0 : index
    %c0_25 = arith.constant 0 : index
    %91 = vector.load %arg7[%c0_22, %c1_23, %c0_24, %c0_25] : memref<1x4x8x128xf32, #tpu.memory_space<vmem>>, vector<1x1x8x128xf32>
    %92 = vector.shape_cast %91 : vector<1x1x8x128xf32> to vector<8x128xf32>
    %93 = vector.shape_cast %90 : vector<8x128xf32> to vector<1x1x8x128xf32>
    tpu.vector_store %arg7[%c0_22, %c1_23, %c0_24, %c0_25], %93 {strides = array<i32>} : memref<1x4x8x128xf32, #tpu.memory_space<vmem>>, vector<1x1x8x128xf32>,
    %94 = vector.extract_strided_slice %1 {offsets = [2, 0, 0], sizes = [1, 8, 128], strides = [1, 1, 1]} : vector<4x8x128xf32> to vector<1x8x128xf32>
    %95 = vector.shape_cast %94 : vector<1x8x128xf32> to vector<8x128xf32>
    %96 = arith.mulf %65, %71 : vector<8x128xf32>
    %cst_26 = arith.constant 1.000000e+00 : f32
    %97 = vector.broadcast %cst_26 : f32 to vector<8x128xf32>
    %98 = arith.addf %96, %97 : vector<8x128xf32>
    %99 = arith.mulf %95, %98 : vector<8x128xf32>
    %cst_27 = arith.constant 0.000000e+00 : f32
    %100 = vector.broadcast %cst_27 : f32 to vector<8x128xf32>
    %101 = arith.maximumf %99, %100 : vector<8x128xf32>
    %c0_28 = arith.constant 0 : index
    %c2_29 = arith.constant 2 : index
    %c0_30 = arith.constant 0 : index
    %c0_31 = arith.constant 0 : index
    %102 = vector.load %arg7[%c0_28, %c2_29, %c0_30, %c0_31] : memref<1x4x8x128xf32, #tpu.memory_space<vmem>>, vector<1x1x8x128xf32>
    %103 = vector.shape_cast %102 : vector<1x1x8x128xf32> to vector<8x128xf32>
    %104 = vector.shape_cast %101 : vector<8x128xf32> to vector<1x1x8x128xf32>
    tpu.vector_store %arg7[%c0_28, %c2_29, %c0_30, %c0_31], %104 {strides = array<i32>} : memref<1x4x8x128xf32, #tpu.memory_space<vmem>>, vector<1x1x8x128xf32>,
    %105 = vector.extract_strided_slice %1 {offsets = [3, 0, 0], sizes = [1, 8, 128], strides = [1, 1, 1]} : vector<4x8x128xf32> to vector<1x8x128xf32>
    %106 = vector.shape_cast %105 : vector<1x8x128xf32> to vector<8x128xf32>
    %107 = arith.mulf %67, %71 : vector<8x128xf32>
    %cst_32 = arith.constant 1.000000e+00 : f32
    %108 = vector.broadcast %cst_32 : f32 to vector<8x128xf32>
    %109 = arith.addf %107, %108 : vector<8x128xf32>
    %110 = arith.mulf %106, %109 : vector<8x128xf32>
    %cst_33 = arith.constant 0.000000e+00 : f32
    %111 = vector.broadcast %cst_33 : f32 to vector<8x128xf32>
    %112 = arith.maximumf %110, %111 : vector<8x128xf32>
    %c0_34 = arith.constant 0 : index
    %c3_35 = arith.constant 3 : index
    %c0_36 = arith.constant 0 : index
    %c0_37 = arith.constant 0 : index
    %113 = vector.load %arg7[%c0_34, %c3_35, %c0_36, %c0_37] : memref<1x4x8x128xf32, #tpu.memory_space<vmem>>, vector<1x1x8x128xf32>
    %114 = vector.shape_cast %113 : vector<1x1x8x128xf32> to vector<8x128xf32>
    %115 = vector.shape_cast %112 : vector<8x128xf32> to vector<1x1x8x128xf32>
    tpu.vector_store %arg7[%c0_34, %c3_35, %c0_36, %c0_37], %115 {strides = array<i32>} : memref<1x4x8x128xf32, #tpu.memory_space<vmem>>, vector<1x1x8x128xf32>,
    return
  }
  func.func @transform_0(%arg0: i32, %arg1: i32) -> (i32, i32, i32, i32) {
    %c0_i32 = arith.constant 0 : i32
    %c0_i32_0 = arith.constant 0 : i32
    %c0_i32_1 = arith.constant 0 : i32
    return %arg0, %c0_i32, %arg1, %c0_i32_0 : i32, i32, i32, i32
  }
  func.func @transform_1(%arg0: i32, %arg1: i32) -> i32 {
    %c0_i32 = arith.constant 0 : i32
    %c0_i32_0 = arith.constant 0 : i32
    return %c0_i32 : i32
  }
  func.func @transform_2(%arg0: i32, %arg1: i32) -> i32 {
    %c0_i32 = arith.constant 0 : i32
    %c0_i32_0 = arith.constant 0 : i32
    return %c0_i32 : i32
  }
  func.func @transform_3(%arg0: i32, %arg1: i32) -> i32 {
    %c0_i32 = arith.constant 0 : i32
    %c0_i32_0 = arith.constant 0 : i32
    return %c0_i32 : i32
  }
  func.func @transform_4(%arg0: i32, %arg1: i32) -> i32 {
    %c0_i32 = arith.constant 0 : i32
    %c0_i32_0 = arith.constant 0 : i32
    return %c0_i32 : i32
  }
  func.func @transform_5(%arg0: i32, %arg1: i32) -> (i32, i32, i32, i32) {
    %c0_i32 = arith.constant 0 : i32
    %c0_i32_0 = arith.constant 0 : i32
    %c0_i32_1 = arith.constant 0 : i32
    return %arg0, %c0_i32, %arg1, %c0_i32_0 : i32, i32, i32, i32
  }
}

</mosaic_0001>

<bundles_post_ra>
// kernel: tpu_custom_call.1
= control target key start
LH: loop header
LB: loop body
LE: loop exit
PB: predicated region body
PF: predicated region fallthrough
CT: control target
= control target key end

     0   :  { %s1129_s0 = inlined_call_operand.hbm [shape: f32[2,4,8,128], index: 0, kind: input, shape index: {}]   ;;  %s1130_s1 = inlined_call_operand.vmem [shape: f32[4], index: 1, kind: input, shape index: {}]   ;;  %s1131_s2 = inlined_call_operand.<no memory space> [shape: f32[1], index: 2, kind: input, shape index: {}]   ;;  %s1132_s3 = inlined_call_operand.vmem [shape: f32[4], index: 3, kind: input, shape index: {}]   ;;  %s1133_s4 = inlined_call_operand.vmem [shape: f32[4], index: 4, kind: input, shape index: {}]   ;;  %s1134_s5 = inlined_call_operand.hbm [shape: f32[2,4,8,128], index: 5, kind: output, shape index: {}]  }
   0x1   :  { %10 = sst [smem:[#allocation2]] %s1131_s2 }
   0x2   :  { %11 = vsyncpa [#allocation4], 0 }
   0x3   :  { %13 = vsyncpa [#allocation4 + $0x1], 0 }
   0x4   :  { %14 = vsyncpa [#allocation6], 0 }
   0x5   :  { %15 = vsyncpa [#allocation9], 0 }
   0x6   :  { %16 = vsyncpa [#allocation5], 0 }
   0x7   :  { %18 = vsyncpa [#allocation5 + $0x1], 0  ;;  %s873_s20 = smov 0   ;;  %s875_s21 = smov 0  }
   0x8   :  { %s877_s22 = smov 0   ;;  %s879_s23 = smov 0  }
   0x9   :  { %s881_s24 = smov 0   ;;  %s883_s25 = smov 0  }
   0xa LB: > { %s522_s2 = sadd.s32 4294967295, %s829_s25   ;;  %s523_s26 = sadd.s32 4294967294, %s829_s25   ;;  %s829_s25 = sphi %s883_s25, %s24_s25   ;;  %s825_s24 = sphi %s881_s24, %s1157_s24   ;;  %s821_s23 = sphi %s879_s23, %s1156_s23   ;;  %s817_s22 = sphi %s877_s22, %s1155_s22   ;;  %s813_s21 = sphi %s875_s21, %s1154_s21   ;;  %s809_s20 = sphi %s873_s20, %s1153_s20  }
   0xb   : > { %p58_p0 = scmp.ne.s32.totalorder %s813_s21, %s809_s20  ;;  %p907_p1 = scmp.eq.s32.totalorder %s522_s2, 0 }
   0xc   : > { %p911_p2 = scmp.eq.s32.totalorder %s522_s2, 1  ;;  %p174_p3 = scmp.eq.s32.totalorder %s523_s26, 1 }
   0xd   : > { %s1139_s27 = scalar_select %p907_p1, 1, 0 }
   0xe   : > { %s1140_s28 = scalar_select %p911_p2, 1, 0 }
   0xf   : > { %p917_p4 = por %p907_p1, %p58_p0  ;;  %p524_p5 = scmp.ge.s32.totalorder %s829_s25, 1 }
  0x10   : > { %p922_p6 = por %p174_p3, %p58_p0  ;;  %p181_p7 = scmp.lt.s32.totalorder %s829_s25, 3 }
  0x11   : > { %s1141_s29 = scalar_select %p917_p4, 1, 0 }
  0x12   : > { %s1142_s30 = scalar_select %p922_p6, 1, 0 }
  0x13   : > { %s208_s8 = sshll.u32 %s1132_s3, 4  ;;  %p930_p8 = pnand %p524_p5, %p181_p7  ;;  %s209_s8 = int_to_ptr.vmem [resolvable:$true] %s208_s8 }
  0x14   : > { %s194_s12 = sshll.u32 %s1130_s1, 4  ;;  %s219_s16 = sshll.u32 %s1133_s4, 4  ;;  %s195_s12 = int_to_ptr.vmem [resolvable:$true] %s194_s12  ;;  %s949_s16 = int_to_ptr.vmem [resolvable:$true] %s219_s16 }
  0x15   : > { %s1143_s9 = scalar_select %p930_p8, 1, 0 }
  0x16   : > { %p573_p10 = pneg %p930_p8  ;;  %s664_s17 = scalar_lea.vmem %s209_s8, 16 }
  0x17   : > { %p665_p12 = scmp.ne.s32.totalorder %s209_s8, %s664_s17  ;;  %p672_p5 = scmp.lt.s32.totalorder %s209_s8, %s209_s8 }
  0x18   : > { %p942_p11 = pnand %p573_p10, %p907_p1  ;;  %p673_p7 = scmp.lt.s32.totalorder %s664_s17, %s664_s17 }
  0x1a   : > { %p666_p13 = pneg %p942_p11  ;;  %p674_p10 = por %p673_p7, %p672_p5 }
  0x1c   : > { %p667_p0 = pnand %p666_p13, %p665_p12 }
  0x1e   : > { %p668_p3 = pneg %p667_p0 }
  0x20   : > { %p675_p9 = pnand %p674_p10, %p668_p3 }
  0x22   : > { %678 = shalt.err (!%p675_p9)
}
  0x23   : > { %s831_s18 = smov [#allocation8]   ;;  %s679_s19 = scalar_lea.vmem %s195_s12, 16 }
  0x24   : > { %579 = dma.vmem_to_smem (!%p942_p11), %s209_s8, 16, %s831_s18, [#allocation9]  }
  0x25   : > { %p680_p6 = scmp.ne.s32.totalorder %s195_s12, %s679_s19  ;;  %p687_p8 = scmp.lt.s32.totalorder %s195_s12, %s195_s12 }
  0x26   : > { %p688_p2 = scmp.lt.s32.totalorder %s679_s19, %s679_s19 }
  0x27   : > { %p682_p1 = pnand %p680_p6, %p666_p13 }
  0x28   : > { %p689_p12 = por %p688_p2, %p687_p8 }
  0x29   : > { %p683_p4 = pneg %p682_p1 }
  0x2b   : > { %p690_p0 = pnand %p689_p12, %p683_p4 }
  0x2d   : > { %693 = shalt.err (!%p690_p0)
}
  0x2e   : > { %s832_s2 = smov [#allocation7]   ;;  %s694_s26 = scalar_lea.vmem %s949_s16, 16 }
  0x2f   : > { %576 = dma.vmem_to_smem (!%p942_p11), %s195_s12, 16, %s832_s2, [#allocation6]  }
  0x30   : > { %p695_p9 = scmp.ne.s32.totalorder %s949_s16, %s694_s26  ;;  %p702_p1 = scmp.lt.s32.totalorder %s949_s16, %s949_s16 }
  0x31   : > { %p703_p5 = scmp.lt.s32.totalorder %s694_s26, %s694_s26 }
  0x32   : > { %p697_p3 = pnand %p695_p9, %p666_p13 }
  0x33   : > { %p704_p2 = por %p703_p5, %p702_p1 }
  0x34   : > { %p698_p6 = pneg %p697_p3 }
  0x36   : > { %p705_p4 = pnand %p704_p2, %p698_p6 }
  0x38   : > { %708 = shalt.err (!%p705_p4)
}
  0x39   : > { %s833_s6 = smov [#allocation10]   ;;  %s45_s7 = sadd.s32 1, %s817_s22 }
  0x3a   : > { %582 = dma.vmem_to_smem (!%p942_p11), %s949_s16, 16, %s833_s6, [#allocation9]  }
  0x3b   : > { %s36_s8 = sadd.s32 1, %s825_s24  ;;  %p52_p8 = scmp.ne.s32.totalorder %s817_s22, %s813_s21 }
  0x3c   : > { %p38_p13 = scmp.ge.s32.totalorder %s36_s8, 2  ;;  %p53_p7 = scmp.eq.s32.totalorder %s829_s25, 0 }
  0x3d   : > { %p1145_p10 = scmp.ne.s32.totalorder %s1140_s28, 0  ;;  %p594_p0 = scmp.lt.s32.totalorder %s829_s25, 2 }
  0x3e   : > { %s1159_s8 = smov (%p38_p13, %s36_s8), 0  ;;  %p54_p9 = por %p53_p7, %p52_p8 }
  0x3f   : > { %p980_p12 = por %p1145_p10, %p52_p8  ;;  %s230_s11 = sand.u32 1, %s817_s22  }
  0x40   : > { %s40_s12 = ssub.s32 %s825_s24, %s1159_s8  ;;  %s529_s13 = sshll.u32 %s230_s11, 5 }
  0x41   : > { %p43_p3 = scmp.eq.s32.totalorder %s40_s12, 0  ;;  %s555_s14 = sshll.u32 %s825_s24, 9 }
  0x42   : > { %s997_s28 = scalar_lea.hbm %s1129_s0, %s555_s14  ;;  %s234_s18 = scalar_lea.vmem [#allocation3], %s529_s13 }
  0x43   : > { %s992_s15 = scalar_select %p43_p3, %s817_s22, %s45_s7  }
  0x44   : > { %s242_s19 = sshll.u32 %s234_s18, 4  ;;  %p1003_p11 = pnand %p594_p0, %p54_p9  ;;  %s999_s19 = int_to_ptr.vmem [resolvable:$true] %s242_s19 }
  0x45   : > { %s1007_s26 = scalar_lea.sflag [#allocation4], %s230_s11  ;;  %s709_s6 = scalar_lea.hbm %s997_s28, 512 }
  0x46   : > { %p710_p6 = scmp.ne.s32.totalorder %s997_s28, %s709_s6  ;;  %p711_p1 = pneg %p1003_p11 }
  0x47   : > { %s714_s13 = scalar_lea.hbm %s1129_s0, 1024  ;;  %p715_p4 = scmp.lt.u32.totalorder %s997_s28, %s1129_s0 }
  0x48   : > { %p712_p5 = pnand %p711_p1, %p710_p6  ;;  %p716_p8 = scmp.lt.u32.totalorder %s714_s13, %s709_s6 }
  0x49   : > { %p718_p7 = scmp.lt.u32.totalorder %s709_s6, %s997_s28 }
  0x4a   : > { %p713_p2 = pneg %p712_p5  ;;  %p717_p13 = por %p716_p8, %p715_p4 }
  0x4c   : > { %p719_p10 = por %p718_p7, %p717_p13 }
  0x4e   : > { %p720_p0 = pnand %p719_p10, %p713_p2 }
  0x50   : > { %723 = shalt.err (!%p720_p0)
}
  0x51   : > { %s724_s11 = scalar_lea.vmem %s999_s19, 512  ;;  %s834_s17 = smov [#allocation3]  }
  0x52   : > { %p725_p9 = scmp.ne.s32.totalorder %s999_s19, %s724_s11  ;;  %s729_s18 = sshll.u32 %s834_s17, 4  ;;  %s730_s18 = int_to_ptr.vmem [resolvable:$false] %s729_s18 }
  0x53   : > { %s731_s7 = scalar_lea.vmem %s730_s18, 1024  ;;  %p732_p5 = scmp.lt.s32.totalorder %s999_s19, %s730_s18 }
  0x54   : > { %p727_p3 = pnand %p725_p9, %p711_p1  ;;  %p733_p4 = scmp.lt.s32.totalorder %s731_s7, %s724_s11 }
  0x56   : > { %p728_p6 = pneg %p727_p3  ;;  %p734_p8 = por %p733_p4, %p732_p5 }
  0x58   : > { %p735_p13 = pnand %p734_p8, %p728_p6 }
  0x5a   : > { %738 = shalt.err (!%p735_p13)
}
  0x5b   : > { %s835_s6 = smov 128   ;;  %s836_s12 = smov 8  }
  0x5c   : > { %586 = dma.hbm_to_vmem [thread:$0]  (!%p1003_p11), %s997_s28, 512, %s999_s19, %s1007_s26, %s835_s6, %s835_s6, %s836_s12  }
  0x5d   : > { %p1148_p1 = scmp.ne.s32.totalorder %s1143_s9, 0 }
  0x5e   : > { %s1038_s13 = sand.u32 (!%p1148_p1), 1, %s813_s21   ;;  %p1149_p2 = scmp.ne.s32.totalorder (!%p1148_p1), %s1141_s29, 0 }
  0x5f   : > { %254 = sbr.rel (%p1148_p1) target bundleno = 197 (0xc5), region = 40  ;;  %s533_s14 = sshll.u32 (!%p1148_p1), %s1038_s13, 5 }
  0x60   : > { %s257_s16 = scalar_lea.sflag (!%p1148_p1), [#allocation4], %s1038_s13  ;;  %s260_s11 = scalar_lea.vmem (!%p1148_p1), [#allocation3], %s533_s14 }
  0x66   : > { %792 = dma.done.wait (%p1149_p2), %s257_s16, 512  }
  0x67   : > { %794 = vsyncadd (%p1149_p2), %s257_s16, 4294966784  ;;  %p1150_p11 = scmp.ne.s32.totalorder %s1139_s27, 0 }
  0x69   : > { %796 = dma.done.wait (%p1150_p11), [#allocation6], 16  }
  0x6a   : > { %798 = vsyncadd (%p1150_p11), [#allocation6], 4294967280 }
  0x6b   : > { %800 = dma.done.wait (%p1150_p11), [#allocation9], 32  }
  0x6c   : > { %802 = vsyncadd (%p1150_p11), [#allocation9], 4294967264 }
  0x6d   : > { %277 = sfence }
  0x6e   : > { %s304_s9 = sld [smem:[#allocation7]]  ;;  %s538_s28 = sld [smem:[#allocation7 + $0x1]]  ;;  %v1056_v0 = vld [vmem:[%s260_s11] sm:$0xff]  ;;  %v1058_v1 = vld [vmem:[%s260_s11 + $0x8] sm:$0xff]  ;;  %v1060_v2 = vld [vmem:[%s260_s11 + $0x10] sm:$0xff] }
  0x6f   : > { %s539_s19 = sld [smem:[#allocation7 + $0x2]]  ;;  %s540_s2 = sld [smem:[#allocation7 + $0x3]]  ;;  %v1062_v4 = vld [vmem:[%s260_s11 + $0x18] sm:$0xff] }
  0x70   : > { %s319_s29 = sld [smem:[#allocation2]]  ;;  %s541_s26 = sld [smem:[#allocation8 + $0x1]] }
  0x71   : > { %s325_s27 = sld [smem:[#allocation8]]  ;;  %s543_s17 = sld [smem:[#allocation8 + $0x2]] }
  0x72   : > { %s545_s18 = sld [smem:[#allocation8 + $0x3]]  ;;  %s328_s7 = sld [smem:[#allocation10]] }
  0x73   : > { %s542_s6 = sld [smem:[#allocation10 + $0x1]]  ;;  %s544_s12 = sld [smem:[#allocation10 + $0x2]] }
  0x74   : > { %v305_v3 = vstv %s304_s9  ;;  %v308_v6 = vstv %s538_s28  ;;  %s546_s16 = sld [smem:[#allocation10 + $0x3]]  ;;  %s299_s11 = scalar_lea.vmem [#allocation11], %s533_s14 }
  0x75   : > { %v306_v5 = vmul.f32 %v305_v3, %v1056_v0  ;;  %v312_v7 = vstv %s539_s19  ;;  %v309_v8 = vmul.f32 %v308_v6, %v1058_v1  ;;  %v316_v10 = vstv %s540_s2  ;;  %s406_s9 = sshll.u32 %s299_s11, 4  ;;  %s556_s28 = sshll.u32 %s821_s23, 9  ;;  %s1075_s9 = int_to_ptr.vmem [resolvable:$true] %s406_s9 }
  0x76   : > { %v313_v9 = vmul.f32 %v312_v7, %v1060_v2  ;;  %v317_v12 = vmul.f32 %v316_v10, %v1062_v4  ;;  %v320_v14 = vstv %s319_s29  ;;  %v332_v18 = vstv %s541_s26  ;;  %s1080_s14 = scalar_lea.hbm %s1134_s5, %s556_s28  ;;  %s392_s23 = scalar_lea.sflag [#allocation5], %s1038_s13 }
  0x77   : > { %v310_v11 = vadd.f32 %v309_v8, %v306_v5  ;;  %v326_v17 = vstv %s325_s27  ;;  %v338_v20 = vstv %s543_s17  ;;  %s739_s29 = scalar_lea.vmem %s1075_s9, 512  ;;  %s837_s27 = smov [#allocation11]  }
  0x78   : > { %v344_v21 = vstv %s545_s18  ;;  %v329_v23 = vstv %s328_s7  ;;  %p740_p7 = scmp.ne.s32.totalorder %s1075_s9, %s739_s29  ;;  %s743_s26 = sshll.u32 %s837_s27, 4  ;;  %s744_s26 = int_to_ptr.vmem [resolvable:$false] %s743_s26 }
  0x79   : > { %v314_v13 = vadd.f32 %v313_v9, %v310_v11  ;;  %v335_v24 = vstv %s542_s6  ;;  %v341_v25 = vstv %s544_s12  ;;  %s745_s17 = scalar_lea.vmem %s744_s26, 1024  ;;  %p746_p9 = scmp.lt.s32.totalorder %s1075_s9, %s744_s26 }
  0x7a   : > { %v347_v30 = vstv %s546_s16  ;;  %p741_p10 = pnand %p740_p7, %p980_p12  ;;  %p747_p3 = scmp.lt.s32.totalorder %s745_s17, %s739_s29 }
  0x7b   : > { %v318_v15 = vadd.f32 %v317_v12, %v314_v13 }
  0x7c   : > { %p742_p0 = pneg %p741_p10  ;;  %p748_p6 = por %p747_p3, %p746_p9 }
  0x7d   : > { %v321_v16 = vadd.f32 %v320_v14, %v318_v15 }
  0x7e   : > { %p749_p5 = pnand %p748_p6, %p742_p0 }
  0x7f   : > { %vm322_vm0 = vcmp.gt.f32.partialorder %v321_v16, 0.0  ;;  %v323_v19 = vmul.f32 0.1, %v321_v16 }
  0x81   : > { %v324_v22 = vsel %vm322_vm0, %v321_v16, %v323_v19 }
  0x82   : > { %v327_v26 = vmul.f32 %v326_v17, %v324_v22  ;;  %v333_v27 = vmul.f32 %v332_v18, %v324_v22  ;;  %v339_v28 = vmul.f32 %v338_v20, %v324_v22  ;;  %v345_v29 = vmul.f32 %v344_v21, %v324_v22 }
  0x84   : > { %v330_v31 = vadd.f32 %v329_v23, %v327_v26  ;;  %v336_v32 = vadd.f32 %v335_v24, %v333_v27  ;;  %v342_v33 = vadd.f32 %v341_v25, %v339_v28  ;;  %v348_v34 = vadd.f32 %v347_v30, %v345_v29 }
  0x86   : > { %v349_v35 = vmax.f32 %v330_v31, %v336_v32 }
  0x88   : > { %v350_v36 = vmax.f32 %v349_v35, %v342_v33 }
  0x8a   : > { %v351_v37 = vmax.f32 %v350_v36, %v348_v34 }
  0x8c   : > { %v352_v38 = vsub.f32 %v330_v31, %v351_v37  ;;  %v355_v39 = vsub.f32 %v336_v32, %v351_v37  ;;  %v358_v40 = vsub.f32 %v342_v33, %v351_v37  ;;  %v361_v41 = vsub.f32 %v348_v34, %v351_v37 }
  0x8e   : > { %v353_v42 = vmul.f32 1.442695, %v352_v38  ;;  %v356_v43 = vmul.f32 1.442695, %v355_v39  ;;  %v359_v44 = vmul.f32 1.442695, %v358_v40 }
  0x8f   : > { %v362_v45 = vmul.f32 1.442695, %v361_v41 }
  0x90   : > { %654 = vpow2.f32 %v353_v42 }
  0x91   : > { %656 = vpow2.f32 %v356_v43 }
  0x92   : > { %658 = vpow2.f32 %v359_v44 }
  0x93   : > { %660 = vpow2.f32 %v362_v45 }
  0x9a   : > { %v655_v46 = vpop.eup %654 }
  0x9b   : > { %v657_v47 = vpop.eup %656 }
  0x9c   : > { %v659_v48 = vpop.eup %658  ;;  %v364_v49 = vadd.f32 %v657_v47, %v655_v46 }
  0x9d   : > { %v661_v50 = vpop.eup %660 }
  0x9e   : > { %v365_v51 = vadd.f32 %v659_v48, %v364_v49 }
  0xa0   : > { %v366_v52 = vadd.f32 %v661_v50, %v365_v51 }
  0xa2   : > { %662 = vrcp.f32 %v366_v52 }
  0xac   : > { %v663_v53 = vpop.eup %662 }
  0xad   : > { %v368_v54 = vmul.f32 %v663_v53, %v655_v46  ;;  %v373_v55 = vmul.f32 %v663_v53, %v657_v47  ;;  %v379_v56 = vmul.f32 %v663_v53, %v659_v48  ;;  %v385_v57 = vmul.f32 %v663_v53, %v661_v50 }
  0xaf   : > { %v369_v58 = vadd.f32 1.0, %v368_v54  ;;  %v374_v59 = vadd.f32 1.0, %v373_v55  ;;  %v380_v60 = vadd.f32 1.0, %v379_v56  ;;  %v386_v61 = vadd.f32 1.0, %v385_v57 }
  0xb1   : > { %v370_v62 = vmul.f32 %v369_v58, %v1056_v0  ;;  %v375_v63 = vmul.f32 %v374_v59, %v1058_v1  ;;  %v381_v3 = vmul.f32 %v380_v60, %v1060_v2  ;;  %v387_v5 = vmul.f32 %v386_v61, %v1062_v4 }
  0xb3   : > { %v371_v6 = vmax.f32 %v370_v62, 0.0  ;;  %v376_v7 = vmax.f32 %v375_v63, 0.0  ;;  %v382_v0 = vmax.f32 %v381_v3, 0.0  ;;  %v388_v8 = vmax.f32 %v387_v5, 0.0 }
  0xb5   : > { %372 = vst [vmem:[%s299_s11] sm:$0xff] %v371_v6  ;;  %547 = vst [vmem:[%s299_s11 + $0x8] sm:$0xff] %v376_v7 }
  0xb6   : > { %548 = vst [vmem:[%s299_s11 + $0x10] sm:$0xff] %v382_v0  ;;  %549 = vst [vmem:[%s299_s11 + $0x18] sm:$0xff] %v388_v8 }
  0xb7   : > { %752 = shalt.err (!%p749_p5)
}
  0xb8   : > { %s753_s18 = scalar_lea.hbm %s1080_s14, 512  ;;  %s757_s12 = scalar_lea.hbm %s1134_s5, 1024 }
  0xb9   : > { %p754_p4 = scmp.ne.s32.totalorder %s1080_s14, %s753_s18  ;;  %p758_p1 = scmp.lt.u32.totalorder %s1080_s14, %s1134_s5 }
  0xba   : > { %p759_p2 = scmp.lt.u32.totalorder %s757_s12, %s753_s18  ;;  %p761_p7 = scmp.lt.u32.totalorder %s753_s18, %s1080_s14 }
  0xbb   : > { %p755_p8 = pnand %p754_p4, %p980_p12 }
  0xbc   : > { %p760_p11 = por %p759_p2, %p758_p1 }
  0xbd   : > { %p756_p13 = pneg %p755_p8 }
  0xbe   : > { %p762_p10 = por %p761_p7, %p760_p11 }
  0xc0   : > { %p763_p0 = pnand %p762_p10, %p756_p13 }
  0xc2   : > { %766 = shalt.err (!%p763_p0)
}
  0xc3   : > { %s838_s28 = smov 128   ;;  %s839_s19 = smov 8  }
  0xc4   : > { %571 = dma.vmem_to_hbm [thread:$0]  (%p980_p12), %s1075_s9, 512, %s1080_s14, %s392_s23, %s838_s28, %s838_s28, %s839_s19  }
  0xc5 PF: > { %s421_s2 = sand.u32 1, %s809_s20   ;;  %p1151_p9 = scmp.ne.s32.totalorder %s1142_s30, 0 }
  0xc6   : > { %p1152_p3 = scmp.ge.s32.totalorder %s829_s25, 2  ;;  %s422_s29 = scalar_lea.sflag [#allocation5], %s421_s2 }
  0xc8   : > { %p588_p6 = pnand %p1152_p3, %p1151_p9 }
  0xca   : > { %804 = dma.done.wait (!%p588_p6), %s422_s29, 512  }
  0xcb   : > { %806 = vsyncadd (!%p588_p6), %s422_s29, 4294966784  ;;  %s24_s25 = sadd.s32 1, %s829_s25   ;;  %s1153_s20 = smov %s813_s21 }
  0xcc   : > { %p21_p5 = scmp.ge.s32.totalorder %s24_s25, 4   ;;  %s1154_s21 = smov %s817_s22 }
  0xcd   : > { %s1155_s22 = smov %s992_s15  ;;  %s1156_s23 = smov %s825_s24 }
  0xce   : > { %s1157_s24 = smov %s1159_s8  ;;  %23 = sbr.rel (!%p21_p5) target bundleno = 10 (0xa), region = 101 }
  0xd5   :  { %427 = vsyncpa [#allocation4], 1 }
  0xd6   :  { %429 = vsyncpa [#allocation4 + $0x1], 1 }
  0xd7   :  { %430 = vsyncpa [#allocation5], 1 }
  0xd8   :  { %432 = vsyncpa [#allocation5 + $0x1], 1 }
  0xd9   :  { %433 = vsyncpa [#allocation6], 1 }
  0xda   :  { %435 = vsyncpa [#allocation6 + $0x1], 1 }
  0xdb   :  { %436 = vsyncpa [#allocation9], 1 }

</bundles_post_ra>
